<compile_context>
chip_gen: v5e
topology: v5e:2x2
jax: 0.10.0
libtpu: 0.0.40
codegen_flags: <defaults>
</compile_context>

<pallas_src>
import functools

import numpy as np

import jax
import jax.numpy as jnp
from jax import lax
from jax.experimental import pallas as pl
from jax.experimental.pallas import tpu as pltpu


# ---------------------------------------------------------------------------
# Static index maps (pure Python ints -> evaluated at trace time)
# ---------------------------------------------------------------------------
def _reflect(j, n):
    if j < 0:
        j = -j
    if j >= n:
        j = 2 * (n - 1) - j
    return j


def _source_map(size, up, pad):
    """padded-upsampled index -> ORIGINAL index (nearest upsample, then reflect pad)."""
    n_up = size * up
    assert 0 <= pad < n_up, "reflection padding must be smaller than upsampled size"
    return [_reflect(i - pad, n_up) // up for i in range(n_up + 2 * pad)]


def _pick_tile_h(h_out, row_bytes, target_bytes=1 << 20):
    """Whole per-batch output in one step when small; else a mult-of-8 divisor of h_out."""
    tile = h_out
    if h_out % 8 == 0:
        while (tile * row_bytes > target_bytes and tile % 2 == 0
               and (tile // 2) % 8 == 0):
            tile //= 2
    return tile


# ---------------------------------------------------------------------------
# Kernel: 2*KH MXU dots per row tile, accumulated in f32 registers.
# ---------------------------------------------------------------------------
def _upsample_conv_kernel(x_ref, r_ref, b_ref, bias_ref, o_ref, *,
                          kh_sz, tile_h, n_lane):
    # x_ref:    (1, H, W*Cin)            original image, one batch element
    # r_ref:    (KH, TH, H)              static 0/1 height gather (upsample+reflect+tap kh)
    # b_ref:    (KH, W*Cin, Wout*Cout)   folded width-upsample/pad/kw-tap/Cin weight
    # bias_ref: (1, Wout*Cout)           bias tiled along the lane axis
    # o_ref:    (1, TH, Wout*Cout)       lane-dense output tile
    x = x_ref[0]                                                      # (H, W*Cin)
    acc = jnp.broadcast_to(bias_ref[...], (tile_h, n_lane)).astype(jnp.float32)
    for kh in range(kh_sz):
        rows = jnp.dot(r_ref[kh], x,
                       preferred_element_type=jnp.float32)           # (TH, W*Cin)
        acc = acc + jnp.dot(rows, b_ref[kh],
                            preferred_element_type=jnp.float32)      # (TH, Wout*Cout)
    o_ref[0] = acc.astype(o_ref.dtype)


# ---------------------------------------------------------------------------
# Wrapper
# ---------------------------------------------------------------------------
def upsample_conv_layer(x_nchw, weight, bias, *, kernel_size, stride, upsample=None):
    """Forward pass of UpsampleConvLayer.

    x_nchw:  (N, Cin, H, W)        float32
    weight:  (Cout, Cin, KH, KW)   float32 (PyTorch conv weight layout)
    bias:    (Cout,)               float32
    returns: (N, Cout, Hout, Wout) float32
    """
    n, c_in, h, w = x_nchw.shape
    c_out, c_in_w, kh_sz, kw_sz = weight.shape
    assert c_in_w == c_in and kh_sz == kernel_size and kw_sz == kernel_size

    up = int(upsample) if upsample else 1
    pad = kernel_size // 2
    hp = up * h + 2 * pad
    wp = up * w + 2 * pad
    h_out = (hp - kh_sz) // stride + 1
    w_out = (wp - kw_sz) // stride + 1
    n_lane = w_out * c_out                       # lane-dense output row width
    k_row = w * c_in                             # lane-fused input row width

    # Static "padded-upsampled index -> source index" maps.
    src_h = _source_map(h, up, pad)              # length hp
    src_w = _source_map(w, up, pad)              # length wp

    # Static 0/1 selection matrices (depend on shapes only, not on weights).
    #   r_sel[kh, oy, h']   = 1  iff  h' == src_h(oy*stride + kh)
    #   e_sel[kw, w',  ox]  = 1  iff  w' == src_w(ox*stride + kw)
    r_sel = np.zeros((kh_sz, h_out, h), np.float32)
    for kh in range(kh_sz):
        for oy in range(h_out):
            r_sel[kh, oy, src_h[oy * stride + kh]] = 1.0
    e_sel = np.zeros((kw_sz, w, w_out), np.float32)
    for kw in range(kw_sz):
        for ox in range(w_out):
            e_sel[kw, src_w[ox * stride + kw], ox] = 1.0

    # Fold width upsample + reflect pad + kw taps + Cin contraction into B:
    #   B[kh, w'*Cin+ci, ox*Cout+co] = sum_kw e_sel[kw, w', ox] * weight[co, ci, kh, kw]
    w_hwio = jnp.transpose(weight, (2, 3, 1, 0))                  # (KH, KW, Cin, Cout)
    b_mat = jnp.einsum('kwx,hkic->hwixc', jnp.asarray(e_sel), w_hwio)
    b_mat = b_mat.reshape(kh_sz, k_row, n_lane)                   # (KH, W*Cin, Wout*Cout)
    bias_lane = jnp.tile(bias, (w_out,)).reshape(1, n_lane)       # bias per (ox, co) lane

    # Cheap layout glue on the ORIGINAL (pre-upsample) tensor only.
    x_flat = jnp.transpose(x_nchw, (0, 2, 3, 1)).reshape(n, h, k_row)   # (N, H, W*Cin)

    tile_h = _pick_tile_h(h_out, n_lane * 4)
    n_tiles = h_out // tile_h

    kernel = functools.partial(_upsample_conv_kernel,
                               kh_sz=kh_sz, tile_h=tile_h, n_lane=n_lane)

    out_flat = pl.pallas_call(
        kernel,
        out_shape=jax.ShapeDtypeStruct((n, h_out, n_lane), x_nchw.dtype),
        grid_spec=pltpu.PrefetchScalarGridSpec(
            num_scalar_prefetch=0,
            grid=(n, n_tiles),
            in_specs=[
                # Original image: block index constant across row tiles -> resident.
                pl.BlockSpec((1, h, k_row), lambda b, t: (b, 0, 0)),
                # Height-gather selection rows for this tile.
                pl.BlockSpec((kh_sz, tile_h, h), lambda b, t: (0, t, 0)),
                # Folded weight matrices: constant block index -> fetched once.
                pl.BlockSpec((kh_sz, k_row, n_lane), lambda b, t: (0, 0, 0)),
                pl.BlockSpec((1, n_lane), lambda b, t: (0, 0)),
            ],
            out_specs=pl.BlockSpec((1, tile_h, n_lane), lambda b, t: (b, t, 0)),
        ),
        compiler_params=pltpu.CompilerParams(
            dimension_semantics=("parallel", "parallel"),
            vmem_limit_bytes=32 * 1024 * 1024),
    )(x_flat, jnp.asarray(r_sel), b_mat, bias_lane)

    out = out_flat.reshape(n, h_out, w_out, c_out)
    return jnp.transpose(out, (0, 3, 1, 2))


# ---------------------------------------------------------------------------
# Pure-JAX reference mirroring the PyTorch forward, for verification.
# ---------------------------------------------------------------------------
def _reference(x_nchw, weight, bias, *, kernel_size, stride, upsample=None):
    x = x_nchw
    if upsample:
        x = jnp.repeat(x, upsample, axis=2)
        x = jnp.repeat(x, upsample, axis=3)
    pad = kernel_size // 2
    x = jnp.pad(x, ((0, 0), (0, 0), (pad, pad), (pad, pad)), mode="reflect")
    out = lax.conv_general_dilated(
        x, weight, window_strides=(stride, stride), padding="VALID",
        dimension_numbers=("NCHW", "OIHW", "NCHW"),
        precision=lax.Precision.HIGHEST)
    return out + bias[None, :, None, None]


if __name__ == "__main__":
    # Module config: UpsampleConvLayer(in_channels=4, out_channels=8,
    #                                  kernel_size=3, stride=1, upsample=2)
    in_channels, out_channels = 4, 8
    kernel_size, stride, upsample = 3, 1, 2

    key = jax.random.PRNGKey(0)
    kx, kw_key, kb = jax.random.split(key, 3)

    x = jax.random.normal(kx, (2, in_channels, 16, 16), dtype=jnp.float32)
    # Deterministic synthetic parameters (not a checkpoint load).
    fan_in = in_channels * kernel_size * kernel_size
    bound = 1.0 / (fan_in ** 0.5)
    weight = jax.random.uniform(
        kw_key, (out_channels, in_channels, kernel_size, kernel_size),
        minval=-bound, maxval=bound, dtype=jnp.float32)
    bias = jax.random.uniform(
        kb, (out_channels,), minval=-bound, maxval=bound, dtype=jnp.float32)

    fwd = jax.jit(functools.partial(
        upsample_conv_layer, kernel_size=kernel_size, stride=stride,
        upsample=upsample))

    out = jax.block_until_ready(fwd(x, weight, bias))

    ref = _reference(x, weight, bias, kernel_size=kernel_size,
                     stride=stride, upsample=upsample)
    assert out.shape == ref.shape == (2, out_channels, 32, 32), out.shape
    # Tolerance sized for MXU pass behaviour on f32 dots; genuine indexing bugs
    # produce O(0.1 - 1) errors, far above this.
    max_err = float(jnp.max(jnp.abs(out - ref)))
    assert jnp.allclose(out, ref, atol=5e-3, rtol=5e-3), (
        f"mismatch vs reference (max abs err {max_err:.2e})")
    print("KERNEL_OK")
</pallas_src>

<mosaic_0001>
module attributes {stable_mosaic.version = 11 : i64} {
  func.func @_upsample_conv_kernel(%arg0: i32, %arg1: i32, %arg2: memref<1x16x64xf32, #tpu.memory_space<vmem>>, %arg3: memref<3x32x16xf32, #tpu.memory_space<vmem>>, %arg4: memref<3x64x256xf32, #tpu.memory_space<vmem>>, %arg5: memref<1x256xf32, #tpu.memory_space<vmem>>, %arg6: memref<1x32x256xf32, #tpu.memory_space<vmem>>) attributes {dimension_semantics = [#tpu.dimension_semantics<parallel>, #tpu.dimension_semantics<parallel>], iteration_bounds = array<i64: 2, 1>, scalar_prefetch = 0 : i64, scratch_operands = 0 : i64, tpu.core_type = #tpu.core_type<tc>, window_params = [{transform_indices = @transform_0, window_bounds = array<i64: 1, 16, 64>}, {transform_indices = @transform_1, window_bounds = array<i64: 3, 32, 16>}, {pipeline_mode = #tpu.pipeline_mode<synchronous>, transform_indices = @transform_2, window_bounds = array<i64: 3, 64, 256>}, {pipeline_mode = #tpu.pipeline_mode<synchronous>, transform_indices = @transform_3, window_bounds = array<i64: 1, 256>}, {transform_indices = @transform_4, window_bounds = array<i64: 1, 32, 256>}]} {
    %c0 = arith.constant 0 : index
    %c0_0 = arith.constant 0 : index
    %c0_1 = arith.constant 0 : index
    %0 = vector.load %arg2[%c0, %c0_0, %c0_1] : memref<1x16x64xf32, #tpu.memory_space<vmem>>, vector<1x16x64xf32>
    %1 = vector.shape_cast %0 : vector<1x16x64xf32> to vector<16x64xf32>
    %c0_2 = arith.constant 0 : index
    %c0_3 = arith.constant 0 : index
    %2 = vector.load %arg5[%c0_2, %c0_3] : memref<1x256xf32, #tpu.memory_space<vmem>>, vector<1x256xf32>
    %3 = vector.shape_cast %2 : vector<1x256xf32> to vector<1x256xf32>
    %4 = vector.broadcast %3 : vector<1x256xf32> to vector<32x256xf32>
    %c0_4 = arith.constant 0 : index
    %c0_5 = arith.constant 0 : index
    %c0_6 = arith.constant 0 : index
    %5 = vector.load %arg3[%c0_4, %c0_5, %c0_6] : memref<3x32x16xf32, #tpu.memory_space<vmem>>, vector<1x32x16xf32>
    %6 = vector.shape_cast %5 : vector<1x32x16xf32> to vector<32x16xf32>
    %cst = arith.constant dense<0.000000e+00> : vector<32x64xf32>
    %7 = tpu.matmul %6, %1, %cst {dimension_numbers = #tpu.dot_dimension_numbers<[1], [0], [0], [1], [0, 0, 1, 1], [], []>} : vector<32x16xf32>, vector<16x64xf32>, vector<32x64xf32> -> vector<32x64xf32>
    %c0_7 = arith.constant 0 : index
    %c0_8 = arith.constant 0 : index
    %c0_9 = arith.constant 0 : index
    %8 = vector.load %arg4[%c0_7, %c0_8, %c0_9] : memref<3x64x256xf32, #tpu.memory_space<vmem>>, vector<1x64x256xf32>
    %9 = vector.shape_cast %8 : vector<1x64x256xf32> to vector<64x256xf32>
    %cst_10 = arith.constant dense<0.000000e+00> : vector<32x256xf32>
    %10 = tpu.matmul %7, %9, %cst_10 {dimension_numbers = #tpu.dot_dimension_numbers<[1], [0], [0], [1], [0, 0, 1, 1], [], []>} : vector<32x64xf32>, vector<64x256xf32>, vector<32x256xf32> -> vector<32x256xf32>
    %11 = arith.addf %4, %10 : vector<32x256xf32>
    %c1 = arith.constant 1 : index
    %c0_11 = arith.constant 0 : index
    %c0_12 = arith.constant 0 : index
    %12 = vector.load %arg3[%c1, %c0_11, %c0_12] : memref<3x32x16xf32, #tpu.memory_space<vmem>>, vector<1x32x16xf32>
    %13 = vector.shape_cast %12 : vector<1x32x16xf32> to vector<32x16xf32>
    %cst_13 = arith.constant dense<0.000000e+00> : vector<32x64xf32>
    %14 = tpu.matmul %13, %1, %cst_13 {dimension_numbers = #tpu.dot_dimension_numbers<[1], [0], [0], [1], [0, 0, 1, 1], [], []>} : vector<32x16xf32>, vector<16x64xf32>, vector<32x64xf32> -> vector<32x64xf32>
    %c1_14 = arith.constant 1 : index
    %c0_15 = arith.constant 0 : index
    %c0_16 = arith.constant 0 : index
    %15 = vector.load %arg4[%c1_14, %c0_15, %c0_16] : memref<3x64x256xf32, #tpu.memory_space<vmem>>, vector<1x64x256xf32>
    %16 = vector.shape_cast %15 : vector<1x64x256xf32> to vector<64x256xf32>
    %cst_17 = arith.constant dense<0.000000e+00> : vector<32x256xf32>
    %17 = tpu.matmul %14, %16, %cst_17 {dimension_numbers = #tpu.dot_dimension_numbers<[1], [0], [0], [1], [0, 0, 1, 1], [], []>} : vector<32x64xf32>, vector<64x256xf32>, vector<32x256xf32> -> vector<32x256xf32>
    %18 = arith.addf %11, %17 : vector<32x256xf32>
    %c2 = arith.constant 2 : index
    %c0_18 = arith.constant 0 : index
    %c0_19 = arith.constant 0 : index
    %19 = vector.load %arg3[%c2, %c0_18, %c0_19] : memref<3x32x16xf32, #tpu.memory_space<vmem>>, vector<1x32x16xf32>
    %20 = vector.shape_cast %19 : vector<1x32x16xf32> to vector<32x16xf32>
    %cst_20 = arith.constant dense<0.000000e+00> : vector<32x64xf32>
    %21 = tpu.matmul %20, %1, %cst_20 {dimension_numbers = #tpu.dot_dimension_numbers<[1], [0], [0], [1], [0, 0, 1, 1], [], []>} : vector<32x16xf32>, vector<16x64xf32>, vector<32x64xf32> -> vector<32x64xf32>
    %c2_21 = arith.constant 2 : index
    %c0_22 = arith.constant 0 : index
    %c0_23 = arith.constant 0 : index
    %22 = vector.load %arg4[%c2_21, %c0_22, %c0_23] : memref<3x64x256xf32, #tpu.memory_space<vmem>>, vector<1x64x256xf32>
    %23 = vector.shape_cast %22 : vector<1x64x256xf32> to vector<64x256xf32>
    %cst_24 = arith.constant dense<0.000000e+00> : vector<32x256xf32>
    %24 = tpu.matmul %21, %23, %cst_24 {dimension_numbers = #tpu.dot_dimension_numbers<[1], [0], [0], [1], [0, 0, 1, 1], [], []>} : vector<32x64xf32>, vector<64x256xf32>, vector<32x256xf32> -> vector<32x256xf32>
    %25 = arith.addf %18, %24 : vector<32x256xf32>
    %c0_25 = arith.constant 0 : index
    %c0_26 = arith.constant 0 : index
    %c0_27 = arith.constant 0 : index
    %26 = vector.load %arg6[%c0_25, %c0_26, %c0_27] : memref<1x32x256xf32, #tpu.memory_space<vmem>>, vector<1x32x256xf32>
    %27 = vector.shape_cast %26 : vector<1x32x256xf32> to vector<32x256xf32>
    %28 = vector.shape_cast %25 : vector<32x256xf32> to vector<1x32x256xf32>
    tpu.vector_store %arg6[%c0_25, %c0_26, %c0_27], %28 {strides = array<i32>} : memref<1x32x256xf32, #tpu.memory_space<vmem>>, vector<1x32x256xf32>,
    return
  }
  func.func @transform_0(%arg0: i32, %arg1: i32) -> (i32, i32, i32) {
    %c0_i32 = arith.constant 0 : i32
    %c0_i32_0 = arith.constant 0 : i32
    %c0_i32_1 = arith.constant 0 : i32
    return %arg0, %c0_i32, %c0_i32_0 : i32, i32, i32
  }
  func.func @transform_1(%arg0: i32, %arg1: i32) -> (i32, i32, i32) {
    %c0_i32 = arith.constant 0 : i32
    %c0_i32_0 = arith.constant 0 : i32
    %c0_i32_1 = arith.constant 0 : i32
    return %c0_i32, %arg1, %c0_i32_0 : i32, i32, i32
  }
  func.func @transform_2(%arg0: i32, %arg1: i32) -> (i32, i32, i32) {
    %c0_i32 = arith.constant 0 : i32
    %c0_i32_0 = arith.constant 0 : i32
    %c0_i32_1 = arith.constant 0 : i32
    %c0_i32_2 = arith.constant 0 : i32
    return %c0_i32, %c0_i32_0, %c0_i32_1 : i32, i32, i32
  }
  func.func @transform_3(%arg0: i32, %arg1: i32) -> (i32, i32) {
    %c0_i32 = arith.constant 0 : i32
    %c0_i32_0 = arith.constant 0 : i32
    %c0_i32_1 = arith.constant 0 : i32
    return %c0_i32, %c0_i32_0 : i32, i32
  }
  func.func @transform_4(%arg0: i32, %arg1: i32) -> (i32, i32, i32) {
    %c0_i32 = arith.constant 0 : i32
    %c0_i32_0 = arith.constant 0 : i32
    return %arg0, %arg1, %c0_i32 : i32, i32, i32
  }
}

</mosaic_0001>

<bundles_post_ra>
// kernel: tile.8
= control target key start
LH: loop header
LB: loop body
LE: loop exit
PB: predicated region body
PF: predicated region fallthrough
CT: control target
= control target key end

     0   :  { %s40_s0 = inlined_call_operand.vmem [shape: f32[8], index: 0, kind: input, shape index: {}]   ;;  %s41_s1 = inlined_call_operand.vmem [shape: f32[32,8], index: 1, kind: output, shape index: {}]  }
   0x1   :  { %v4_v0 = vld [vmem:[%s40_s0] ss:$0 sm:$0xff] }
   0x2   :  { %5 = vst [vmem:[%s41_s1] sm:$0xff] %v4_v0 }
   0x3   :  { %12 = vst [vmem:[%s41_s1 + $0x8] sm:$0xff] %v4_v0 }
   0x4   :  { %13 = vst [vmem:[%s41_s1 + $0x10] sm:$0xff] %v4_v0 }
   0x5   :  { %14 = vst [vmem:[%s41_s1 + $0x18] sm:$0xff] %v4_v0 }

// kernel: tile.9
= control target key start
LH: loop header
LB: loop body
LE: loop exit
PB: predicated region body
PF: predicated region fallthrough
CT: control target
= control target key end

     0   :  { %s7_s6 = smov 3  ;;  %s21_s9 = smov 3  ;;  %vm4_vm0 = vcmask 64512   ;;  %vm11_vm1 = vcmask 1048512   ;;  %vm18_vm2 = vcmask 982912   ;;  %vm25_vm3 = vcmask 917312   ;;  %s233_s0 = inlined_call_operand.vmem [shape: f32[32,8], index: 0, kind: input, shape index: {}]   ;;  %s234_s1 = inlined_call_operand.vmem [shape: f32[1,256], index: 1, kind: output, shape index: {}]  }
   0x1   :  { %v123_v0 = vld [vmem:[%s233_s0 + $0xf] ss:$16 sm:%s7_s6]   ;;  %s154_s10 = smov 120   ;;  %v125_v1 = vld [vmem:[%s233_s0 + $0xd] ss:$16 sm:%s21_s9]   ;;  %s155_s13 = smov 104  }
   0x2   :  { %9 = vrot.lane.b32.xlu0 %v123_v0, %s154_s10  ;;  %23 = vrot.lane.b32.xlu1 %v125_v1, %s155_s13  ;;  %s14_s14 = smov 3  ;;  %s28_s15 = smov 3  ;;  %vm32_vm4 = vcmask 851712   ;;  %vm39_vm5 = vcmask 786112   ;;  %vm46_vm6 = vcmask 720512   ;;  %vm53_vm7 = vcmask 654912  }
   0x3   :  { %v124_v2 = vld [vmem:[%s233_s0 + $0xe] ss:$16 sm:%s14_s14]   ;;  %v126_v3 = vld [vmem:[%s233_s0 + $0xc] ss:$16 sm:%s28_s15]   ;;  %s35_s20 = smov 3  ;;  %s156_s23 = smov 112  }
   0x4   :  { %v127_v4 = vld [vmem:[%s233_s0 + $0xb] ss:$16 sm:%s35_s20]   ;;  %s157_s24 = smov 88   ;;  %s158_s25 = smov 96   ;;  %vm60_vm8 = vcmask 589312   ;;  %vm67_vm9 = vcmask 523712  }
   0x5   :  { %37 = vrot.lane.b32.xlu2 %v127_v4, %s157_s24  ;;  %s49_s26 = smov 3  ;;  %s42_s27 = smov 3  ;;  %vm74_vm10 = vcmask 458112   ;;  %vm81_vm11 = vcmask 392512   ;;  %vm88_vm12 = vcmask 326912   ;;  %vm95_vm13 = vcmask 261312  }
   0x6   :  { %s56_s28 = smov 3  ;;  %v129_v5 = vld [vmem:[%s233_s0 + $0x9] ss:$16 sm:%s49_s26]   ;;  %v128_v6 = vld [vmem:[%s233_s0 + $0xa] ss:$16 sm:%s42_s27]   ;;  %s159_s6 = smov 72  }
   0x7   :  { %v130_v7 = vld [vmem:[%s233_s0 + $0x8] ss:$16 sm:%s56_s28]   ;;  %s160_s7 = smov 80   ;;  %s161_s8 = smov 64   ;;  %vm102_vm14 = vcmask 195712   ;;  %vm109_vm15 = vcmask 130112  }
   0x8   :  { %s70_s9 = smov 3  ;;  %s63_s10 = smov 3 }
   0x9   :  { %s77_s11 = smov 3  ;;  %v132_v8 = vld [vmem:[%s233_s0 + $0x6] ss:$16 sm:%s70_s9]   ;;  %v131_v9 = vld [vmem:[%s233_s0 + $0x7] ss:$16 sm:%s63_s10]   ;;  %s162_s18 = smov 48  }
   0xa   :  { %16 = vrot.lane.b32.xlu0 %v124_v2, %s156_s23  ;;  %30 = vrot.lane.b32.xlu1 %v126_v3, %s158_s25  ;;  %v133_v10 = vld [vmem:[%s233_s0 + $0x5] ss:$16 sm:%s77_s11]   ;;  %s163_s19 = smov 56   ;;  %s164_s20 = smov 40  }
   0xb   :  { %s91_s21 = smov 3  ;;  %s84_s22 = smov 3 }
   0xc   :  { %s98_s23 = smov 3  ;;  %v135_v11 = vld [vmem:[%s233_s0 + $0x3] ss:$16 sm:%s91_s21]   ;;  %v134_v12 = vld [vmem:[%s233_s0 + $0x4] ss:$16 sm:%s84_s22]   ;;  %s165_s30 = smov 24  }
   0xd   :  { %44 = vrot.lane.b32.xlu2 %v128_v6, %s160_s7  ;;  %v136_v13 = vld [vmem:[%s233_s0 + $0x2] ss:$16 sm:%s98_s23]   ;;  %s166_s2 = smov 32   ;;  %s167_s3 = smov 16  }
   0xe   :  { %s105_s4 = smov 3  ;;  %s168_s7 = smov 8  }
   0xf   :  { %v137_v14 = vld [vmem:[%s233_s0 + $0x1] ss:$16 sm:%s105_s4]  }
  0x12   :  { %51 = vrot.lane.b32.xlu0 %v129_v5, %s159_s6  ;;  %58 = vrot.lane.b32.xlu1 %v130_v7, %s161_s8  ;;  %s2_s8 = smov 3 }
  0x13   :  { %v3_v15 = vld [vmem:[%s233_s0] ss:$16 sm:%s2_s8]  }
  0x14   :  { %5 = vst.msk [vmem:[#allocation0] ss:$8 sm:$0x3] %vm4_vm0, %v3_v15  }
  0x15   :  { %65 = vrot.lane.b32.xlu2 %v131_v9, %s163_s19 }
  0x1a   :  { %72 = vrot.lane.b32.xlu0 %v132_v8, %s162_s18  ;;  %79 = vrot.lane.b32.xlu1 %v133_v10, %s164_s20 }
  0x1d   :  { %86 = vrot.lane.b32.xlu2 %v134_v12, %s166_s2 }
  0x22   :  { %93 = vrot.lane.b32.xlu0 %v135_v11, %s165_s30  ;;  %100 = vrot.lane.b32.xlu1 %v136_v13, %s167_s3 }
  0x25   :  { %107 = vrot.lane.b32.xlu2 %v137_v14, %s168_s7 }
  0x5f   :  { %v38_v16 = vpop.permute.xlu2 %37  }
  0x67   :  { %v45_v17 = vpop.permute.xlu2 %44  }
  0x6f   :  { %v66_v19 = vpop.permute.xlu2 %65  }
  0x74   :  { %v10_v18 = vpop.permute.xlu0 %9   ;;  %v24_v20 = vpop.permute.xlu1 %23  }
  0x75   :  { %12 = vst.msk [vmem:[#allocation0] ss:$8 sm:$0x3] %vm11_vm1, %v10_v18  }
  0x77   :  { %v87_v22 = vpop.permute.xlu2 %86  }
  0x7c   :  { %v17_v21 = vpop.permute.xlu0 %16   ;;  %v31_v23 = vpop.permute.xlu1 %30  }
  0x7d   :  { %19 = vst.msk [vmem:[#allocation0] ss:$8 sm:$0x3] %vm18_vm2, %v17_v21  }
  0x7e   :  { %26 = vst.msk [vmem:[#allocation0] ss:$8 sm:$0x3] %vm25_vm3, %v24_v20  }
  0x7f   :  { %33 = vst.msk [vmem:[#allocation0] ss:$8 sm:$0x3] %vm32_vm4, %v31_v23   ;;  %v108_v25 = vpop.permute.xlu2 %107  }
  0x80   :  { %40 = vst.msk [vmem:[#allocation0] ss:$8 sm:$0x3] %vm39_vm5, %v38_v16  }
  0x81   :  { %47 = vst.msk [vmem:[#allocation0] ss:$8 sm:$0x3] %vm46_vm6, %v45_v17  }
  0x84   :  { %v52_v24 = vpop.permute.xlu0 %51   ;;  %v59_v26 = vpop.permute.xlu1 %58  }
  0x85   :  { %54 = vst.msk [vmem:[#allocation0] ss:$8 sm:$0x3] %vm53_vm7, %v52_v24  }
  0x86   :  { %61 = vst.msk [vmem:[#allocation0] ss:$8 sm:$0x3] %vm60_vm8, %v59_v26  }
  0x87   :  { %68 = vst.msk [vmem:[#allocation0] ss:$8 sm:$0x3] %vm67_vm9, %v66_v19  }
  0x8c   :  { %v73_v27 = vpop.permute.xlu0 %72   ;;  %v80_v28 = vpop.permute.xlu1 %79  }
  0x8d   :  { %75 = vst.msk [vmem:[#allocation0] ss:$8 sm:$0x3] %vm74_vm10, %v73_v27  }
  0x8e   :  { %82 = vst.msk [vmem:[#allocation0] ss:$8 sm:$0x3] %vm81_vm11, %v80_v28  }
  0x8f   :  { %89 = vst.msk [vmem:[#allocation0] ss:$8 sm:$0x3] %vm88_vm12, %v87_v22  }
  0x94   :  { %v94_v29 = vpop.permute.xlu0 %93   ;;  %v101_v30 = vpop.permute.xlu1 %100  }
  0x95   :  { %96 = vst.msk [vmem:[#allocation0] ss:$8 sm:$0x3] %vm95_vm13, %v94_v29  }
  0x96   :  { %103 = vst.msk [vmem:[#allocation0] ss:$8 sm:$0x3] %vm102_vm14, %v101_v30  }
  0x97   :  { %110 = vst.msk [vmem:[#allocation0] ss:$8 sm:$0x3] %vm109_vm15, %v108_v25  }
  0x9e   :  { %v113_v31 = vld [vmem:[#allocation0] sm:$0x1]  ;;  %v118_v32 = vld [vmem:[#allocation0 + $0x8] sm:$0x1] }
  0x9f   :  { %116 = vst [vmem:[%s234_s1] sm:$0x1] %v113_v31 }
  0xa0   :  { %138 = vst [vmem:[%s234_s1 + $0x1] sm:$0x1] %v118_v32 }

// kernel: upsample_conv_layer.1
= control target key start
LH: loop header
LB: loop body
LE: loop exit
PB: predicated region body
PF: predicated region fallthrough
CT: control target
= control target key end

     0   :  { %s951_s15 = smov 0   ;;  %s953_s16 = smov 0   ;;  %s1220_s0 = inlined_call_operand.vmem [shape: f32[2,16,64], index: 0, kind: input, shape index: {}]   ;;  %s1221_s1 = inlined_call_operand.vmem [shape: f32[3,32,16], index: 1, kind: input, shape index: {}]   ;;  %s1222_s2 = inlined_call_operand.vmem [shape: f32[3,64,256], index: 2, kind: input, shape index: {}]   ;;  %s1223_s3 = inlined_call_operand.vmem [shape: f32[1,256], index: 3, kind: input, shape index: {}]   ;;  %s1224_s4 = inlined_call_operand.vmem [shape: f32[2,32,256], index: 4, kind: output, shape index: {}]  }
   0x1   :  { %s955_s17 = smov 0  }
   0x2 LB: > { %s26_s18 = sadd.s32 1, %s920_s16  ;;  %p791_p0 = scmp.ge.s32.totalorder %s924_s17, 1  ;;  %s924_s17 = sphi %s955_s17, %s14_s17   ;;  %s920_s16 = sphi %s953_s16, %s1226_s16   ;;  %s916_s15 = sphi %s951_s15, %s1225_s15  }
   0x3   : > { %p28_p1 = scmp.ge.s32.totalorder %s26_s18, 2  ;;  %p187_p2 = scmp.lt.s32.totalorder %s924_s17, 3 }
   0x5   : > { %s1228_s18 = smov (%p28_p1, %s26_s18), 0  ;;  %p188_p3 = pnand %p791_p0, %p187_p2 }
   0x6   : > { %p223_p4 = scmp.lt.s32.totalorder (!%p188_p3), %s916_s15, 1 }
   0x7   : > { %191 = sbr.rel (%p188_p3) target bundleno = 462 (0x1ce), region = 36 }
   0xc   : > { %s1230_s15 = smov (!%p223_p4, %s916_s15), 1  ;;  %v253_v2 = vld [vmem:[%s1221_s1] sm:$0xff]  ;;  %vm257_vm0 = vcmask 130048   ;;  %v255_v3 = vld [vmem:[%s1221_s1 + $0x10] sm:$0xff]  ;;  %v254_v4 = vld [vmem:[%s1221_s1 + $0x8] sm:$0xff]  ;;  %vm315_vm1 = vcmask 523264  }
   0xd   : > { %s874_s19 = sshll.u32 %s1230_s15, 4  ;;  %v256_v5 = vld [vmem:[%s1221_s1 + $0x18] sm:$0xff]  ;;  %v313_v6 = vld [vmem:[%s1222_s2 + $0x70] sm:$0xff]  ;;  %v311_v8 = vld [vmem:[%s1222_s2 + $0x60] sm:$0xff]  ;;  %s875_s9 = sshll.u32 %s1230_s15, 6 }
   0xe   : > { %s227_s22 = scalar_lea.vmem %s1220_s0, %s874_s19  ;;  %v314_v7 = vld [vmem:[%s1222_s2 + $0x78] sm:$0xff]  ;;  %336 = vmatpush.msra.mxu1 %v313_v6  ;;  %v312_v9 = vld [vmem:[%s1222_s2 + $0x68] sm:$0xff]  ;;  %v309_v10 = vld [vmem:[%s1222_s2 + $0x50] sm:$0xff]  ;;  %s1200_s12 = scalar_lea.vmem %s1224_s4, %s875_s9 }
   0xf   : > { %v246_v0 = vld [vmem:[%s227_s22 + $0x8] sm:$0xff]  ;;  %v245_v1 = vld [vmem:[%s227_s22] sm:$0xff]  ;;  %365 = vmatpush.msra.mxu2 %v314_v7  ;;  %v310_v11 = vld [vmem:[%s1222_s2 + $0x58] sm:$0xff] }
  0x10   : > { %284 = vmatpush.msra.mxu0 %v246_v0  ;;  %876 = vmatpush.msra.mxu3 %v246_v0  ;;  %v307_v12 = vld [vmem:[%s1222_s2 + $0x40] sm:$0xff]  ;;  %v308_v13 = vld [vmem:[%s1222_s2 + $0x48] sm:$0xff]  ;;  %v305_v15 = vld [vmem:[%s1222_s2 + $0x30] sm:$0xff] }
  0x11   : > { %337 = vmatpush.msra.mxu1 %v311_v8  ;;  %366 = vmatpush.msra.mxu2 %v312_v9  ;;  %v808_v14 = vld [vmem:[%s1221_s1 + $0x20] sm:$0xff]  ;;  %v306_v16 = vld [vmem:[%s1222_s2 + $0x38] sm:$0xff]  ;;  %v304_v18 = vld [vmem:[%s1222_s2 + $0x28] sm:$0xff] }
  0x12   : > { %285 = vmatpush.msra.mxu0 %v245_v1  ;;  %877 = vmatpush.msra.mxu3 %v245_v1  ;;  %v303_v17 = vld [vmem:[%s1222_s2 + $0x20] sm:$0xff]  ;;  %v301_v19 = vld [vmem:[%s1222_s2 + $0x10] sm:$0xff]  ;;  %v302_v20 = vld [vmem:[%s1222_s2 + $0x18] sm:$0xff] }
  0x13   : > { %796 = vmatmul.msk.f32.vlgmr.msra.gmra.mxu0 %vm257_vm0, %v253_v2  ;;  %798 = vmatmul.msk.f32.vlgmr.msra.gmra.mxu3 %vm257_vm0, %v255_v3  ;;  %v809_v21 = vld [vmem:[%s1221_s1 + $0x28] sm:$0xff]  ;;  %v810_v22 = vld [vmem:[%s1221_s1 + $0x30] sm:$0xff]  ;;  %v811_v23 = vld [vmem:[%s1221_s1 + $0x38] sm:$0xff] }
  0x14   : > { %425 = vmatpush.msrb.mxu3 %v246_v0  ;;  %338 = vmatpush.msra.mxu1 %v309_v10  ;;  %v299_v24 = vld [vmem:[%s1222_s2] sm:$0xff]  ;;  %v300_v25 = vld [vmem:[%s1222_s2 + $0x8] sm:$0xff]  ;;  %v830_v26 = vld [vmem:[%s1222_s2 + $0xf0] sm:$0xff] }
  0x15   : > { %367 = vmatpush.msra.mxu2 %v310_v11  ;;  %v831_v27 = vld [vmem:[%s1222_s2 + $0xf8] sm:$0xff]  ;;  %477 = vmatpush.msrb.mxu0 %v830_v26  ;;  %v828_v28 = vld [vmem:[%s1222_s2 + $0xe0] sm:$0xff]  ;;  %v829_v29 = vld [vmem:[%s1222_s2 + $0xe8] sm:$0xff] }
  0x16   : > { %426 = vmatpush.msrb.mxu3 %v245_v1  ;;  %339 = vmatpush.msra.mxu1 %v307_v12  ;;  %v826_v30 = vld [vmem:[%s1222_s2 + $0xd0] sm:$0xff]  ;;  %v827_v31 = vld [vmem:[%s1222_s2 + $0xd8] sm:$0xff]  ;;  %v824_v32 = vld [vmem:[%s1222_s2 + $0xc0] sm:$0xff] }
  0x17   : > { %368 = vmatpush.msra.mxu2 %v308_v13  ;;  %478 = vmatpush.msrb.mxu0 %v828_v28  ;;  %v825_v33 = vld [vmem:[%s1222_s2 + $0xc8] sm:$0xff]  ;;  %v822_v34 = vld [vmem:[%s1222_s2 + $0xb0] sm:$0xff]  ;;  %v823_v35 = vld [vmem:[%s1222_s2 + $0xb8] sm:$0xff] }
  0x18   : > { %340 = vmatpush.msra.mxu1 %v305_v15  ;;  %506 = vmatpush.msra.mxu3 %v831_v27  ;;  %v820_v36 = vld [vmem:[%s1222_s2 + $0xa0] sm:$0xff]  ;;  %v821_v37 = vld [vmem:[%s1222_s2 + $0xa8] sm:$0xff]  ;;  %v818_v38 = vld [vmem:[%s1222_s2 + $0x90] sm:$0xff] }
  0x19   : > { %369 = vmatpush.msra.mxu2 %v306_v16  ;;  %479 = vmatpush.msrb.mxu0 %v826_v30  ;;  %v819_v39 = vld [vmem:[%s1222_s2 + $0x98] sm:$0xff]  ;;  %v816_v40 = vld [vmem:[%s1222_s2 + $0x80] sm:$0xff]  ;;  %v817_v41 = vld [vmem:[%s1222_s2 + $0x88] sm:$0xff] }
  0x1a   : > { %341 = vmatpush.msra.mxu1 %v303_v17  ;;  %507 = vmatpush.msra.mxu3 %v829_v29  ;;  %v840_v48 = vld [vmem:[%s1221_s1 + $0x40] sm:$0xff]  ;;  %v841_v50 = vld [vmem:[%s1221_s1 + $0x48] sm:$0xff]  ;;  %v842_v52 = vld [vmem:[%s1221_s1 + $0x50] sm:$0xff] }
  0x1b   : > { %797 = vmatmul.msk.f32.gmra.mxu0 %vm257_vm0, %v254_v4  ;;  %799 = vmatmul.msk.f32.gmra.mxu3 %vm257_vm0, %v256_v5  ;;  %v843_v53 = vld [vmem:[%s1221_s1 + $0x58] sm:$0xff]  ;;  %v862_v54 = vld [vmem:[%s1222_s2 + $0x170] sm:$0xff]  ;;  %v860_v55 = vld [vmem:[%s1222_s2 + $0x160] sm:$0xff] }
  0x1c   : > { %370 = vmatpush.msra.mxu2 %v304_v18  ;;  %342 = vmatpush.msra.mxu1 %v301_v19  ;;  %v863_v56 = vld [vmem:[%s1222_s2 + $0x178] sm:$0xff]  ;;  %v858_v57 = vld [vmem:[%s1222_s2 + $0x150] sm:$0xff]  ;;  %v861_v58 = vld [vmem:[%s1222_s2 + $0x168] sm:$0xff] }
  0x1d   : > { %508 = vmatpush.msra.mxu3 %v827_v31  ;;  %480 = vmatpush.msrb.mxu0 %v824_v32  ;;  %v856_v59 = vld [vmem:[%s1222_s2 + $0x140] sm:$0xff]  ;;  %v859_v60 = vld [vmem:[%s1222_s2 + $0x158] sm:$0xff]  ;;  %v854_v61 = vld [vmem:[%s1222_s2 + $0x130] sm:$0xff] }
  0x1e   : > { %371 = vmatpush.msra.mxu2 %v302_v20  ;;  %343 = vmatpush.msra.mxu1 %v299_v24  ;;  %v857_v62 = vld [vmem:[%s1222_s2 + $0x148] sm:$0xff]  ;;  %v852_v63 = vld [vmem:[%s1222_s2 + $0x120] sm:$0xff]  ;;  %v851_v4 = vld [vmem:[%s1222_s2 + $0x118] sm:$0xff] }
  0x1f   : > { %509 = vmatpush.msra.mxu3 %v825_v33  ;;  %481 = vmatpush.msrb.mxu0 %v822_v34  ;;  %v853_v2 = vld [vmem:[%s1222_s2 + $0x128] sm:$0xff]  ;;  %v848_v3 = vld [vmem:[%s1222_s2 + $0x100] sm:$0xff] }
  0x20   : > { %372 = vmatpush.msra.mxu2 %v300_v25  ;;  %566 = vmatpush.msrb.mxu1 %v246_v0  ;;  %v855_v0 = vld [vmem:[%s1222_s2 + $0x138] sm:$0xff]  ;;  %v849_v5 = vld [vmem:[%s1222_s2 + $0x108] sm:$0xff] }
  0x21   : > { %510 = vmatpush.msra.mxu3 %v823_v35  ;;  %482 = vmatpush.msrb.mxu0 %v820_v36 }
  0x22   : > { %567 = vmatpush.msrb.mxu1 %v245_v1  ;;  %618 = vmatpush.msrb.mxu2 %v862_v54  ;;  %v850_v1 = vld [vmem:[%s1222_s2 + $0x110] sm:$0xff] }
  0x23   : > { %812 = vmatmul.msk.f32.vlgmr.msrb.gmra.mxu3 %vm257_vm0, %v808_v14  ;;  %483 = vmatpush.msrb.mxu0 %v818_v38 }
  0x24   : > { %511 = vmatpush.msra.mxu3 %v821_v37  ;;  %619 = vmatpush.msrb.mxu2 %v860_v55 }
  0x25   : > { %484 = vmatpush.msrb.mxu0 %v816_v40 }
  0x26   : > { %512 = vmatpush.msra.mxu3 %v819_v39  ;;  %620 = vmatpush.msrb.mxu2 %v858_v57 }
  0x27   : > { %647 = vmatpush.msra.mxu0 %v863_v56 }
  0x28   : > { %513 = vmatpush.msra.mxu3 %v817_v41  ;;  %621 = vmatpush.msrb.mxu2 %v856_v59 }
  0x29   : > { %648 = vmatpush.msra.mxu0 %v861_v58 }
  0x2a   : > { %622 = vmatpush.msrb.mxu2 %v854_v61 }
  0x2b   : > { %813 = vmatmul.msk.f32.gmra.mxu3 %vm257_vm0, %v809_v21  ;;  %649 = vmatpush.msra.mxu0 %v859_v60  ;;  %v247_v21 = vld [vmem:[%s1223_s3] sm:$0x3] }
  0x2c   : > { %623 = vmatpush.msrb.mxu2 %v852_v63  ;;  %v249_v26 = vperm.slane %v247_v21, 0 }
  0x2d   : > { %650 = vmatpush.msra.mxu0 %v857_v62 }
  0x2e   : > { %624 = vmatpush.msrb.mxu2 %v850_v1 }
  0x2f   : > { %651 = vmatpush.msra.mxu0 %v855_v0 }
  0x30   : > { %625 = vmatpush.msrb.mxu2 %v848_v3 }
  0x31   : > { %652 = vmatpush.msra.mxu0 %v853_v2 }
  0x33   : > { %814 = vmatmul.msk.f32.gmra.mxu3 %vm257_vm0, %v810_v22  ;;  %653 = vmatpush.msra.mxu0 %v851_v4 }
  0x35   : > { %654 = vmatpush.msra.mxu0 %v849_v5 }
  0x3b   : > { %815 = vmatmul.msk.f32.gmra.mxu3 %vm257_vm0, %v811_v23  ;;  %v250_v23 = vperm.slane %v247_v21, 1 }
  0x90   : > { %v287_v42 = vpop.f32.mrf.mxu0 }
  0x91   : > { %800 = vmatmul.msk.f32.vlgmr.msra.gmra.mxu1 %vm315_vm1, %v287_v42  ;;  %804 = vmatmul.msk.f32.vlgmr.msra.gmra.mxu2 %vm315_vm1, %v287_v42 }
  0x96   : > { %v293_v43 = vpop.f32.mrf.mxu3 }
  0x98   : > { %v290_v44 = vpop.f32.mrf.mxu0 }
  0x99   : > { %801 = vmatmul.msk.f32.gmra.mxu1 %vm315_vm1, %v290_v44  ;;  %805 = vmatmul.msk.f32.gmra.mxu2 %vm315_vm1, %v290_v44 }
  0x9e   : > { %v296_v45 = vpop.f32.mrf.mxu3 }
  0xa1   : > { %802 = vmatmul.msk.f32.gmra.mxu1 %vm315_vm1, %v293_v43  ;;  %806 = vmatmul.msk.f32.gmra.mxu2 %vm315_vm1, %v293_v43 }
  0xa6   : > { %v428_v46 = vpop.f32.mrf.mxu3 }
  0xa7   : > { %832 = vmatmul.msk.f32.vlgmr.msrb.gmra.mxu0 %vm315_vm1, %v428_v46  ;;  %836 = vmatmul.msk.f32.vlgmr.msra.gmra.mxu3 %vm315_vm1, %v428_v46 }
  0xa9   : > { %803 = vmatmul.msk.f32.gmra.mxu1 %vm315_vm1, %v296_v45  ;;  %807 = vmatmul.msk.f32.gmra.mxu2 %vm315_vm1, %v296_v45 }
  0xae   : > { %v431_v47 = vpop.f32.mrf.mxu3 }
  0xaf   : > { %833 = vmatmul.msk.f32.gmra.mxu0 %vm315_vm1, %v431_v47  ;;  %837 = vmatmul.msk.f32.gmra.mxu3 %vm315_vm1, %v431_v47 }
  0xb1   : > { %844 = vmatmul.msk.f32.vlgmr.msrb.gmra.mxu1 %vm257_vm0, %v840_v48 }
  0xb6   : > { %v434_v49 = vpop.f32.mrf.mxu3 }
  0xb7   : > { %834 = vmatmul.msk.f32.gmra.mxu0 %vm315_vm1, %v434_v49  ;;  %838 = vmatmul.msk.f32.gmra.mxu3 %vm315_vm1, %v434_v49 }
  0xb9   : > { %845 = vmatmul.msk.f32.gmra.mxu1 %vm257_vm0, %v841_v50 }
  0xbe   : > { %v437_v51 = vpop.f32.mrf.mxu3 }
  0xbf   : > { %835 = vmatmul.msk.f32.gmra.mxu0 %vm315_vm1, %v437_v51  ;;  %839 = vmatmul.msk.f32.gmra.mxu3 %vm315_vm1, %v437_v51 }
  0xc1   : > { %846 = vmatmul.msk.f32.gmra.mxu1 %vm257_vm0, %v842_v52 }
  0xc9   : > { %847 = vmatmul.msk.f32.gmra.mxu1 %vm257_vm0, %v843_v53 }
 0x10e   : > { %v345_v6 = vpop.f32.mrf.mxu1 }
 0x10f   : > { %v386_v31 = vadd.f32 %v345_v6, %v249_v26 }
 0x114   : > { %v374_v15 = vpop.f32.mrf.mxu2 }
 0x115   : > { %v387_v24 = vadd.f32 %v374_v15, %v250_v23 }
 0x116   : > { %v348_v7 = vpop.f32.mrf.mxu1 }
 0x117   : > { %v388_v40 = vadd.f32 %v348_v7, %v249_v26 }
 0x11c   : > { %v377_v17 = vpop.f32.mrf.mxu2 }
 0x11d   : > { %v389_v32 = vadd.f32 %v377_v17, %v250_v23 }
 0x11e   : > { %v351_v8 = vpop.f32.mrf.mxu1 }
 0x11f   : > { %v390_v48 = vadd.f32 %v351_v8, %v249_v26 }
 0x124   : > { %v486_v14 = vpop.f32.mrf.mxu0  ;;  %v380_v19 = vpop.f32.mrf.mxu2 }
 0x125   : > { %v527_v33 = vadd.f32 %v486_v14, %v386_v31  ;;  %v391_v41 = vadd.f32 %v380_v19, %v250_v23 }
 0x126   : > { %v1183_v9 = vpop.f32.mrf.mxu1 }
 0x127   : > { %v392_v57 = vadd.f32 %v1183_v9, %v249_v26 }
 0x12a   : > { %v515_v20 = vpop.f32.mrf.mxu3 }
 0x12b   : > { %v528_v27 = vadd.f32 %v515_v20, %v387_v24 }
 0x12c   : > { %v489_v16 = vpop.f32.mrf.mxu0  ;;  %v383_v25 = vpop.f32.mrf.mxu2 }
 0x12d   : > { %v529_v42 = vadd.f32 %v489_v16, %v388_v40  ;;  %v393_v50 = vadd.f32 %v383_v25, %v250_v23 }
 0x12e   : > { %v569_v10 = vpop.f32.mrf.mxu1 }
 0x12f   : > { %864 = vmatmul.msk.f32.vlgmr.msrb.gmra.mxu2 %vm315_vm1, %v569_v10  ;;  %868 = vmatmul.msk.f32.vlgmr.msra.gmra.mxu0 %vm315_vm1, %v569_v10 }
 0x132   : > { %v518_v28 = vpop.f32.mrf.mxu3 }
 0x133   : > { %v530_v35 = vadd.f32 %v518_v28, %v389_v32 }
 0x134   : > { %v492_v18 = vpop.f32.mrf.mxu0 }
 0x135   : > { %v531_v51 = vadd.f32 %v492_v18, %v390_v48 }
 0x136   : > { %v572_v11 = vpop.f32.mrf.mxu1 }
 0x137   : > { %865 = vmatmul.msk.f32.gmra.mxu2 %vm315_vm1, %v572_v11  ;;  %869 = vmatmul.msk.f32.gmra.mxu0 %vm315_vm1, %v572_v11 }
 0x13a   : > { %v521_v39 = vpop.f32.mrf.mxu3 }
 0x13b   : > { %v532_v44 = vadd.f32 %v521_v39, %v391_v41 }
 0x13c   : > { %v495_v22 = vpop.f32.mrf.mxu0 }
 0x13d   : > { %v533_v58 = vadd.f32 %v495_v22, %v392_v57 }
 0x13e   : > { %v575_v12 = vpop.f32.mrf.mxu1 }
 0x13f   : > { %866 = vmatmul.msk.f32.gmra.mxu2 %vm315_vm1, %v575_v12  ;;  %870 = vmatmul.msk.f32.gmra.mxu0 %vm315_vm1, %v575_v12 }
 0x142   : > { %v524_v49 = vpop.f32.mrf.mxu3 }
 0x143   : > { %v534_v53 = vadd.f32 %v524_v49, %v393_v50 }
 0x146   : > { %v578_v13 = vpop.f32.mrf.mxu1 }
 0x147   : > { %867 = vmatmul.msk.f32.gmra.mxu2 %vm315_vm1, %v578_v13  ;;  %871 = vmatmul.msk.f32.gmra.mxu0 %vm315_vm1, %v578_v13 }
 0x1ac   : > { %v656_v29 = vpop.f32.mrf.mxu0 }
 0x1ad   : > { %v669_v30 = vadd.f32 %v656_v29, %v528_v27 }
 0x1af   : > { %677 = vst [vmem:[%s1200_s12 + $0x8] sm:$0xff] %v669_v30 }
 0x1b2   : > { %v627_v34 = vpop.f32.mrf.mxu2 }
 0x1b3   : > { %v668_v36 = vadd.f32 %v627_v34, %v527_v33 }
 0x1b4   : > { %v659_v37 = vpop.f32.mrf.mxu0 }
 0x1b5   : > { %676 = vst [vmem:[%s1200_s12] sm:$0xff] %v668_v36  ;;  %v671_v38 = vadd.f32 %v659_v37, %v530_v35 }
 0x1b7   : > { %679 = vst [vmem:[%s1200_s12 + $0x18] sm:$0xff] %v671_v38 }
 0x1ba   : > { %v630_v43 = vpop.f32.mrf.mxu2 }
 0x1bb   : > { %v670_v45 = vadd.f32 %v630_v43, %v529_v42 }
 0x1bc   : > { %v662_v46 = vpop.f32.mrf.mxu0 }
 0x1bd   : > { %678 = vst [vmem:[%s1200_s12 + $0x10] sm:$0xff] %v670_v45  ;;  %v673_v47 = vadd.f32 %v662_v46, %v532_v44 }
 0x1bf   : > { %681 = vst [vmem:[%s1200_s12 + $0x28] sm:$0xff] %v673_v47 }
 0x1c2   : > { %v633_v52 = vpop.f32.mrf.mxu2 }
 0x1c3   : > { %v672_v54 = vadd.f32 %v633_v52, %v531_v51 }
 0x1c4   : > { %v665_v55 = vpop.f32.mrf.mxu0 }
 0x1c5   : > { %680 = vst [vmem:[%s1200_s12 + $0x20] sm:$0xff] %v672_v54  ;;  %v675_v56 = vadd.f32 %v665_v55, %v534_v53 }
 0x1c7   : > { %683 = vst [vmem:[%s1200_s12 + $0x38] sm:$0xff] %v675_v56 }
 0x1ca   : > { %v636_v59 = vpop.f32.mrf.mxu2 }
 0x1cb   : > { %v674_v60 = vadd.f32 %v636_v59, %v533_v58 }
 0x1cd   : > { %682 = vst [vmem:[%s1200_s12 + $0x30] sm:$0xff] %v674_v60 }
 0x1ce PF: > { %s14_s17 = sadd.s32 1, %s924_s17   ;;  %s1225_s15 = smov %s920_s16 }
 0x1cf   : > { %p11_p5 = scmp.ge.s32.totalorder %s14_s17, 4   ;;  %s1226_s16 = smov %s1228_s18 }
 0x1d1   :  { %13 = sbr.rel (!%p11_p5) target bundleno = 2 (0x2), region = 73 }

</bundles_post_ra>
